<compile_context>
chip_gen: v7x
topology: tpu7x:2x2x1
jax: 0.10.0
libtpu: 0.0.40
codegen_flags: <defaults>
</compile_context>

<pallas_src>
import functools

import jax
import jax.numpy as jnp
from jax import lax
from jax.experimental import pallas as pl
from jax.experimental.pallas import tpu as pltpu

EPSILON = 1e-06

_MIB = 1 << 20
_TARGET_STEP_BYTES = 4 * _MIB      # HBM bytes (pred + mask) moved per grid step
_MAX_BATCH_BLOCK = 8               # bound on the static batch unroll in the kernel


# --------------------------------------------------------------------------- #
# Hardware queries (safe fallbacks when unavailable).
# --------------------------------------------------------------------------- #
def _vmem_capacity_bytes():
    try:
        return int(pltpu.get_tpu_info().vmem_capacity_bytes)
    except Exception:
        return 64 * _MIB           # conservative (v7x); v5e/v6e have 128 MiB


def _num_tensorcores():
    try:
        info = pltpu.get_tpu_info()
        for attr in ("num_cores", "tensorcore_count", "num_tensorcores", "core_count"):
            n = getattr(info, attr, None)
            if n:
                return int(n)
    except Exception:
        pass
    return 1


def _sublane_multiple(itemsize):
    # Elements per (8, 128) layout tile along the sublane axis for this dtype.
    return 8 * max(1, 4 // itemsize)


def _pad_to(x, m):
    return ((x + m - 1) // m) * m


# --------------------------------------------------------------------------- #
# Tile selection: size tiles by bytes-per-step within a VMEM budget.
# --------------------------------------------------------------------------- #
def _select_tiling(N, C, HW, pred_dtype, mask_dtype, *, lane_tile=None, batch_block=None):
    ip = jnp.dtype(pred_dtype).itemsize
    im = jnp.dtype(mask_dtype).itemsize
    # VMEM bytes per (batch-elem, lane) column across both double-buffered inputs.
    vmem_per_lane = 2 * (_pad_to(C, _sublane_multiple(ip)) * ip
                         + _pad_to(C, _sublane_multiple(im)) * im)
    # HBM bytes per (batch-elem, lane) column (what actually streams).
    hbm_per_lane = C * (ip + im)

    budget = int(_vmem_capacity_bytes() * 0.4)   # budget for the input pipeline windows
    cores = _num_tensorcores()

    # ---- lane (spatial) tile -------------------------------------------------
    if lane_tile is not None:
        tm = min(int(lane_tile), HW)
        if tm < HW and tm % 128 != 0:
            raise ValueError("lane_tile must be a multiple of 128 (or >= H*W)")
    elif HW * vmem_per_lane <= budget:
        tm = HW                                   # whole spatial extent in one step
    else:
        lanes_cap = max(((budget // vmem_per_lane) // 128) * 128, 128)
        lanes_goal = min(
            lanes_cap,
            max(((_TARGET_STEP_BYTES // hbm_per_lane) // 128) * 128, 512))
        # Prefer the largest 128-multiple <= lanes_goal that divides HW (no tail mask).
        tm = 0
        cand = lanes_goal
        floor_cand = max(lanes_goal // 2, 128)
        while cand >= floor_cand:
            if HW % cand == 0:
                tm = cand
                break
            cand -= 128
        if tm == 0:
            tm = lanes_goal

    # ---- batch block (only when one lane tile already covers HW) -------------
    if batch_block is not None:
        n_blk = int(batch_block)
    elif tm == HW:
        target_lanes = max(_TARGET_STEP_BYTES // hbm_per_lane, 1)
        fit = max(budget // max(HW * vmem_per_lane, 1), 1)
        want = -(-target_lanes // HW)             # ceil div
        cap = max(min(fit, want, N, _MAX_BATCH_BLOCK), 1)
        if cores > 1:                              # keep >= `cores` batch blocks
            cap = min(cap, max(N // cores, 1))
        n_blk = max(d for d in range(1, cap + 1) if N % d == 0)
    else:
        n_blk = 1
    if N % n_blk != 0:
        raise ValueError("batch_block must divide the batch size")

    return n_blk, tm


# --------------------------------------------------------------------------- #
# Kernel: per-batch-block partial dice sums with a resident (2, C) accumulator.
# --------------------------------------------------------------------------- #
def _dice_sums_kernel(pred_ref, mask_ref, out_ref, acc_ref, *,
                      hw, tile_m, n_blk, needs_mask, approx):
    # pred_ref / mask_ref: (n_blk, C, tile_m) tile; lanes = spatial, sublanes = channels.
    # out_ref:  (2, C) per batch-block sums (row 0 = intersection, row 1 = cardinality).
    # acc_ref:  (2, C) f32 VMEM accumulator, resident across the spatial (m) axis.
    m_idx = pl.program_id(1)
    c = pred_ref.shape[1]

    @pl.when(m_idx == 0)
    def _():
        acc_ref[...] = jnp.zeros_like(acc_ref)

    if needs_mask:
        col = m_idx * tile_m + lax.broadcasted_iota(jnp.int32, (c, tile_m), 1)
        valid = col < hw

    inter = jnp.zeros((c,), jnp.float32)
    card = jnp.zeros((c,), jnp.float32)

    # Static unroll over the (small) batch block; every op below is a plain 2-D
    # (C, tile_m) op: sublane softmax + lane reductions.
    for n in range(n_blk):
        x = pred_ref[n].astype(jnp.float32)
        t = mask_ref[n].astype(jnp.float32)
        if needs_mask:
            # Must zero BEFORE exp: out-of-bounds tail lanes hold undefined data.
            x = jnp.where(valid, x, 0.0)
            t = jnp.where(valid, t, 0.0)
        xm = jnp.max(x, axis=0, keepdims=True)
        e = jnp.exp(x - xm)
        inv = pl.reciprocal(jnp.sum(e, axis=0, keepdims=True), approx=approx)
        prob = e * inv
        inter = inter + jnp.sum(prob * t, axis=1)
        card = card + jnp.sum(prob + t, axis=1)

    if needs_mask:
        # Padded columns softmax to 1/C per channel and have t == 0; remove their
        # cardinality contribution analytically instead of a third where().
        pad_cols = jnp.maximum((m_idx + 1) * tile_m - hw, 0).astype(jnp.float32)
        card = card - (float(n_blk) / float(c)) * pad_cols

    acc_ref[...] += jnp.stack([inter, card], axis=0)

    @pl.when(m_idx == pl.num_programs(1) - 1)
    def _():
        out_ref[...] = acc_ref[...]


# --------------------------------------------------------------------------- #
# Wrapper (matches DiceLossWithLogtis.forward semantics).
# --------------------------------------------------------------------------- #
def dice_loss_with_logits(pred, mask, *, approx_reciprocal=True,
                          lane_tile=None, batch_block=None):
    """pred, mask: (N, C, H, W). mask may be any dtype holding the one-hot targets
    (f32 / bf16 / int8); it is streamed in its native dtype and upcast in-kernel."""
    N, C, H, W = pred.shape
    assert mask.shape == pred.shape
    HW = H * W

    pred_r = pred.reshape(N, C, HW)       # free reshapes — no HBM transpose pass
    mask_r = mask.reshape(N, C, HW)

    n_blk, tm = _select_tiling(N, C, HW, pred.dtype, mask.dtype,
                               lane_tile=lane_tile, batch_block=batch_block)
    num_nb = N // n_blk
    num_m = pl.cdiv(HW, tm)
    needs_mask = (HW % tm) != 0

    ip = jnp.dtype(pred.dtype).itemsize
    im = jnp.dtype(mask.dtype).itemsize

    # VMEM: 2 pipeline buffers per input window (+ tiny out/scratch); generous margin.
    window = n_blk * tm * (_pad_to(C, _sublane_multiple(ip)) * ip
                           + _pad_to(C, _sublane_multiple(im)) * im)
    vmem_limit = int(min(_vmem_capacity_bytes() * 0.9,
                         max(32 * _MIB, 4 * window + 2 * _MIB)))

    # Batch axis may be core-sharded (v7x has 2 TCs). NOTE: the (2, C) accumulator is
    # re-zeroed at m == 0 per batch block, so only the batch axis may ever be
    # core-parallel; the m (reduction) axis must stay serial.
    cores = _num_tensorcores()
    batch_sem = (pltpu.CORE_PARALLEL
                 if cores > 1 and num_nb % cores == 0 else "parallel")

    elems = N * C * HW
    cost = pl.CostEstimate(flops=8 * elems,
                           transcendentals=elems,
                           bytes_accessed=elems * (ip + im) + num_nb * 2 * C * 4)

    kernel = functools.partial(
        _dice_sums_kernel, hw=HW, tile_m=tm, n_blk=n_blk,
        needs_mask=needs_mask, approx=approx_reciprocal)

    sums = pl.pallas_call(
        kernel,
        out_shape=jax.ShapeDtypeStruct((num_nb, 2, C), jnp.float32),
        grid_spec=pltpu.PrefetchScalarGridSpec(
            num_scalar_prefetch=0,
            grid=(num_nb, num_m),
            in_specs=[
                pl.BlockSpec((n_blk, C, tm), lambda nb, m: (nb, 0, m)),
                pl.BlockSpec((n_blk, C, tm), lambda nb, m: (nb, 0, m)),
            ],
            out_specs=pl.BlockSpec((pl.Squeezed(), 2, C), lambda nb, m: (nb, 0, 0)),
            scratch_shapes=[pltpu.VMEM((2, C), jnp.float32)],
        ),
        compiler_params=pltpu.CompilerParams(
            dimension_semantics=(batch_sem, "arbitrary"),
            vmem_limit_bytes=vmem_limit),
        cost_estimate=cost,
    )(pred_r, mask_r)

    total = jnp.sum(sums, axis=0)                  # (2, C): reduce per-block partials
    intersection = total[0]
    cardinality = total[1]
    dice = jnp.mean(2.0 * intersection / (cardinality + EPSILON))
    return 1.0 - dice


# --------------------------------------------------------------------------- #
# Reference + self-test.
# --------------------------------------------------------------------------- #
def _reference(pred, mask):
    prob = jax.nn.softmax(pred.astype(jnp.float32), axis=1)
    t = mask.astype(jnp.float32)
    dims = (0, 2, 3)
    inter = jnp.sum(prob * t, axis=dims)
    card = jnp.sum(prob + t, axis=dims)
    return 1.0 - jnp.mean(2.0 * inter / (card + EPSILON))


def _one_hot_nchw(labels, num_classes, dtype):
    return jnp.transpose(jax.nn.one_hot(labels, num_classes, dtype=dtype), (0, 3, 1, 2))


if __name__ == "__main__":
    key = jax.random.PRNGKey(0)
    k1, k2, k3, k4, k5, k6 = jax.random.split(key, 6)

    cases = []

    # Case 1: canonical small shape; default tiling -> one (n_blk=2, C, 256) block.
    N, C, H, W = 2, 4, 16, 16
    pred = jax.random.normal(k1, (N, C, H, W), dtype=jnp.float32)
    mask = _one_hot_nchw(jax.random.randint(k2, (N, H, W), 0, C), C, jnp.float32)
    cases.append(("aligned_f32", pred, mask, {}))

    # Case 2: ragged spatial extent that still fits in one full-HW block (no masking).
    N, C, H, W = 2, 4, 10, 15
    pred = jax.random.normal(k3, (N, C, H, W), dtype=jnp.float32)
    mask = _one_hot_nchw(jax.random.randint(k4, (N, H, W), 0, C), C, jnp.float32)
    cases.append(("ragged_f32", pred, mask, {}))

    # Case 3: bf16 inputs (native-dtype DMA, halves mask traffic) with a forced small
    # lane tile so the multi-step reduction + cheap tail-mask path is exercised.
    N, C, H, W = 2, 4, 15, 20
    pred = jax.random.normal(k5, (N, C, H, W), dtype=jnp.bfloat16)
    mask = _one_hot_nchw(jax.random.randint(k6, (N, H, W), 0, C), C, jnp.bfloat16)
    cases.append(("tail_bf16", pred, mask, {"lane_tile": 128, "batch_block": 1}))

    for name, pred_i, mask_i, kwargs in cases:
        ref = jax.block_until_ready(_reference(pred_i, mask_i))
        exact = jax.block_until_ready(
            dice_loss_with_logits(pred_i, mask_i, approx_reciprocal=False, **kwargs))
        fast = jax.block_until_ready(
            dice_loss_with_logits(pred_i, mask_i, approx_reciprocal=True, **kwargs))
        assert jnp.allclose(exact, ref, atol=1e-5, rtol=1e-5), (name, exact, ref)
        # The approx EUP reciprocal perturbs softmax normalization by O(1e-4) relative.
        assert jnp.allclose(fast, ref, atol=5e-3, rtol=5e-3), (name, fast, ref)

    print("KERNEL_OK")
</pallas_src>

<mosaic_0001>
module attributes {stable_mosaic.version = 11 : i64} {
  func.func @_dice_sums_kernel(%arg0: i32, %arg1: i32, %arg2: memref<2x4x256xf32, #tpu.memory_space<vmem>>, %arg3: memref<2x4x256xf32, #tpu.memory_space<vmem>>, %arg4: memref<1x2x4xf32, #tpu.memory_space<vmem>>, %arg5: memref<2x4xf32, #tpu.memory_space<vmem>>) attributes {dimension_semantics = [#tpu.dimension_semantics<parallel>, #tpu.dimension_semantics<arbitrary>], iteration_bounds = array<i64: 1, 1>, scalar_prefetch = 0 : i64, scratch_operands = 1 : i64, tpu.core_type = #tpu.core_type<tc>, window_params = [{transform_indices = @transform_0, window_bounds = array<i64: 2, 4, 256>}, {transform_indices = @transform_1, window_bounds = array<i64: 2, 4, 256>}, {transform_indices = @transform_2, window_bounds = array<i64: 1, 2, 4>}]} {
    %c0_i32 = arith.constant 0 : i32
    %0 = arith.cmpi eq, %arg1, %c0_i32 : i32
    %1 = arith.extui %0 : i1 to i32
    %c0_i32_0 = arith.constant 0 : i32
    %2 = arith.cmpi ne, %1, %c0_i32_0 : i32
    scf.if %2 {
      %cst_26 = arith.constant 0.000000e+00 : f32
      %54 = vector.broadcast %cst_26 : f32 to vector<2x4xf32>
      %c0_27 = arith.constant 0 : index
      %c0_28 = arith.constant 0 : index
      %55 = vector.load %arg5[%c0_27, %c0_28] : memref<2x4xf32, #tpu.memory_space<vmem>>, vector<2x4xf32>
      tpu.vector_store %arg5[%c0_27, %c0_28], %54 {strides = array<i32>} : memref<2x4xf32, #tpu.memory_space<vmem>>, vector<2x4xf32>,
    } else {
    }
    %cst = arith.constant 0.000000e+00 : f32
    %3 = vector.broadcast %cst : f32 to vector<4xf32>
    %cst_1 = arith.constant 0.000000e+00 : f32
    %4 = vector.broadcast %cst_1 : f32 to vector<4xf32>
    %c0 = arith.constant 0 : index
    %c0_2 = arith.constant 0 : index
    %c0_3 = arith.constant 0 : index
    %5 = vector.load %arg2[%c0, %c0_2, %c0_3] : memref<2x4x256xf32, #tpu.memory_space<vmem>>, vector<1x4x256xf32>
    %6 = vector.shape_cast %5 : vector<1x4x256xf32> to vector<4x256xf32>
    %c0_4 = arith.constant 0 : index
    %c0_5 = arith.constant 0 : index
    %c0_6 = arith.constant 0 : index
    %7 = vector.load %arg3[%c0_4, %c0_5, %c0_6] : memref<2x4x256xf32, #tpu.memory_space<vmem>>, vector<1x4x256xf32>
    %8 = vector.shape_cast %7 : vector<1x4x256xf32> to vector<4x256xf32>
    %cst_7 = arith.constant dense<0xFF800000> : vector<256xf32>
    %9 = vector.multi_reduction <maximumf>, %6, %cst_7 [0] : vector<4x256xf32> to vector<256xf32>
    %10 = vector.shape_cast %9 : vector<256xf32> to vector<1x256xf32>
    %11 = vector.broadcast %10 : vector<1x256xf32> to vector<4x256xf32>
    %12 = arith.subf %6, %11 : vector<4x256xf32>
    %13 = math.exp %12 : vector<4x256xf32>
    %cst_8 = arith.constant dense<0.000000e+00> : vector<256xf32>
    %14 = vector.multi_reduction <add>, %13, %cst_8 [0] : vector<4x256xf32> to vector<256xf32>
    %15 = vector.shape_cast %14 : vector<256xf32> to vector<1x256xf32>
    %16 = tpu.reciprocal %15 : vector<1x256xf32> -> vector<1x256xf32>
    %17 = vector.broadcast %16 : vector<1x256xf32> to vector<4x256xf32>
    %18 = arith.mulf %13, %17 : vector<4x256xf32>
    %19 = arith.mulf %18, %8 : vector<4x256xf32>
    %cst_9 = arith.constant dense<0.000000e+00> : vector<4xf32>
    %20 = vector.multi_reduction <add>, %19, %cst_9 [1] : vector<4x256xf32> to vector<4xf32>
    %21 = arith.addf %3, %20 : vector<4xf32>
    %22 = arith.addf %18, %8 : vector<4x256xf32>
    %cst_10 = arith.constant dense<0.000000e+00> : vector<4xf32>
    %23 = vector.multi_reduction <add>, %22, %cst_10 [1] : vector<4x256xf32> to vector<4xf32>
    %24 = arith.addf %4, %23 : vector<4xf32>
    %c1 = arith.constant 1 : index
    %c0_11 = arith.constant 0 : index
    %c0_12 = arith.constant 0 : index
    %25 = vector.load %arg2[%c1, %c0_11, %c0_12] : memref<2x4x256xf32, #tpu.memory_space<vmem>>, vector<1x4x256xf32>
    %26 = vector.shape_cast %25 : vector<1x4x256xf32> to vector<4x256xf32>
    %c1_13 = arith.constant 1 : index
    %c0_14 = arith.constant 0 : index
    %c0_15 = arith.constant 0 : index
    %27 = vector.load %arg3[%c1_13, %c0_14, %c0_15] : memref<2x4x256xf32, #tpu.memory_space<vmem>>, vector<1x4x256xf32>
    %28 = vector.shape_cast %27 : vector<1x4x256xf32> to vector<4x256xf32>
    %cst_16 = arith.constant dense<0xFF800000> : vector<256xf32>
    %29 = vector.multi_reduction <maximumf>, %26, %cst_16 [0] : vector<4x256xf32> to vector<256xf32>
    %30 = vector.shape_cast %29 : vector<256xf32> to vector<1x256xf32>
    %31 = vector.broadcast %30 : vector<1x256xf32> to vector<4x256xf32>
    %32 = arith.subf %26, %31 : vector<4x256xf32>
    %33 = math.exp %32 : vector<4x256xf32>
    %cst_17 = arith.constant dense<0.000000e+00> : vector<256xf32>
    %34 = vector.multi_reduction <add>, %33, %cst_17 [0] : vector<4x256xf32> to vector<256xf32>
    %35 = vector.shape_cast %34 : vector<256xf32> to vector<1x256xf32>
    %36 = tpu.reciprocal %35 : vector<1x256xf32> -> vector<1x256xf32>
    %37 = vector.broadcast %36 : vector<1x256xf32> to vector<4x256xf32>
    %38 = arith.mulf %33, %37 : vector<4x256xf32>
    %39 = arith.mulf %38, %28 : vector<4x256xf32>
    %cst_18 = arith.constant dense<0.000000e+00> : vector<4xf32>
    %40 = vector.multi_reduction <add>, %39, %cst_18 [1] : vector<4x256xf32> to vector<4xf32>
    %41 = arith.addf %21, %40 : vector<4xf32>
    %42 = arith.addf %38, %28 : vector<4x256xf32>
    %cst_19 = arith.constant dense<0.000000e+00> : vector<4xf32>
    %43 = vector.multi_reduction <add>, %42, %cst_19 [1] : vector<4x256xf32> to vector<4xf32>
    %44 = arith.addf %24, %43 : vector<4xf32>
    %c0_20 = arith.constant 0 : index
    %c0_21 = arith.constant 0 : index
    %45 = vector.load %arg5[%c0_20, %c0_21] : memref<2x4xf32, #tpu.memory_space<vmem>>, vector<2x4xf32>
    %46 = vector.shape_cast %41 : vector<4xf32> to vector<1x4xf32>
    %47 = vector.shape_cast %44 : vector<4xf32> to vector<1x4xf32>
    %48 = tpu.concatenate %46, %47 in 0 : vector<1x4xf32>, vector<1x4xf32> -> vector<2x4xf32>
    %49 = arith.addf %45, %48 : vector<2x4xf32>
    %c0_22 = arith.constant 0 : index
    %c0_23 = arith.constant 0 : index
    %50 = vector.load %arg5[%c0_22, %c0_23] : memref<2x4xf32, #tpu.memory_space<vmem>>, vector<2x4xf32>
    tpu.vector_store %arg5[%c0_22, %c0_23], %49 {strides = array<i32>} : memref<2x4xf32, #tpu.memory_space<vmem>>, vector<2x4xf32>,
    %c0_i32_24 = arith.constant 0 : i32
    %51 = arith.cmpi eq, %arg1, %c0_i32_24 : i32
    %52 = arith.extui %51 : i1 to i32
    %c0_i32_25 = arith.constant 0 : i32
    %53 = arith.cmpi ne, %52, %c0_i32_25 : i32
    scf.if %53 {
      %c0_26 = arith.constant 0 : index
      %c0_27 = arith.constant 0 : index
      %54 = vector.load %arg5[%c0_26, %c0_27] : memref<2x4xf32, #tpu.memory_space<vmem>>, vector<2x4xf32>
      %c0_28 = arith.constant 0 : index
      %c0_29 = arith.constant 0 : index
      %c0_30 = arith.constant 0 : index
      %55 = vector.load %arg4[%c0_28, %c0_29, %c0_30] : memref<1x2x4xf32, #tpu.memory_space<vmem>>, vector<1x2x4xf32>
      %56 = vector.shape_cast %55 : vector<1x2x4xf32> to vector<2x4xf32>
      %57 = vector.shape_cast %54 : vector<2x4xf32> to vector<1x2x4xf32>
      tpu.vector_store %arg4[%c0_28, %c0_29, %c0_30], %57 {strides = array<i32>} : memref<1x2x4xf32, #tpu.memory_space<vmem>>, vector<1x2x4xf32>,
    } else {
    }
    return
  }
  func.func @transform_0(%arg0: i32, %arg1: i32) -> (i32, i32, i32) {
    %c0_i32 = arith.constant 0 : i32
    %c0_i32_0 = arith.constant 0 : i32
    return %arg0, %c0_i32, %arg1 : i32, i32, i32
  }
  func.func @transform_1(%arg0: i32, %arg1: i32) -> (i32, i32, i32) {
    %c0_i32 = arith.constant 0 : i32
    %c0_i32_0 = arith.constant 0 : i32
    return %arg0, %c0_i32, %arg1 : i32, i32, i32
  }
  func.func @transform_2(%arg0: i32, %arg1: i32) -> (i32, i32, i32) {
    %c0_i32 = arith.constant 0 : i32
    %c0_i32_0 = arith.constant 0 : i32
    %c0_i32_1 = arith.constant 0 : i32
    return %arg0, %c0_i32, %c0_i32_0 : i32, i32, i32
  }
}

</mosaic_0001>

<bundles_post_ra>
// kernel: tpu_custom_call.1
= control target key start
LH: loop header
LB: loop body
LE: loop exit
PB: predicated region body
PF: predicated region fallthrough
CT: control target
= control target key end

     0   :  { %7 = vsyncpa [#allocation4], 0  ;;  %s398_s0 = inlined_call_operand.hbm [shape: f32[2,4,256], index: 0, kind: input, shape index: {}]   ;;  %s399_s1 = inlined_call_operand.hbm [shape: f32[2,4,256], index: 1, kind: input, shape index: {}]   ;;  %s400_s2 = inlined_call_operand.hbm [shape: f32[1,2,4], index: 2, kind: output, shape index: {}]  }
   0x1   :  { %8 = vsyncpa [#allocation7], 0 }
   0x2   :  { %9 = vsyncpa [#allocation5], 0  ;;  %s322_s9 = smov [#allocation3]   ;;  %s250_s13 = scalar_lea.hbm %s398_s0, 256 }
   0x3   :  { %s15_s10 = sshll.u32 %s322_s9, 4  ;;  %p251_p0 = scmp.ne.s32.totalorder %s398_s0, %s250_s13  ;;  %s16_s10 = int_to_ptr.vmem [resolvable:$true] %s15_s10 }
   0x4   :  { %p254_p1 = scmp.lt.u32.totalorder %s250_s13, %s398_s0 }
   0x6   :  { %p256_p2 = pnand %p254_p1, %p251_p0 }
   0x8   :  { %259 = shalt.err (!%p256_p2)
}
   0x9   :  { %s260_s18 = scalar_lea.vmem %s16_s10, 256  ;;  %p265_p4 = scmp.lt.s32.totalorder %s16_s10, %s16_s10 }
   0xa   :  { %p261_p3 = scmp.ne.s32.totalorder %s16_s10, %s260_s18  ;;  %p266_p5 = scmp.lt.s32.totalorder %s260_s18, %s260_s18 }
   0xc   :  { %p267_p6 = por %p266_p5, %p265_p4 }
   0xe   :  { %p268_p7 = pnand %p267_p6, %p261_p3 }
  0x10   :  { %271 = shalt.err (!%p268_p7)
}
  0x11   :  { %s323_s19 = smov 128   ;;  %s324_s20 = smov 8  }
  0x12   :  { %21 = dma.hbm_to_vmem [thread:$0]  %s398_s0, 256, %s16_s10, [#allocation4], %s323_s19, %s323_s19, %s324_s20  }
  0x13   :  { %s325_s23 = smov [#allocation6]   ;;  %s272_s27 = scalar_lea.hbm %s399_s1, 256 }
  0x14   :  { %s27_s24 = sshll.u32 %s325_s23, 4  ;;  %p273_p8 = scmp.ne.s32.totalorder %s399_s1, %s272_s27  ;;  %s28_s24 = int_to_ptr.vmem [resolvable:$true] %s27_s24 }
  0x15   :  { %p276_p9 = scmp.lt.u32.totalorder %s272_s27, %s399_s1 }
  0x17   :  { %p278_p10 = pnand %p276_p9, %p273_p8 }
  0x19   :  { %281 = shalt.err (!%p278_p10)
}
  0x1a   :  { %s282_s4 = scalar_lea.vmem %s28_s24, 256  ;;  %p287_p12 = scmp.lt.s32.totalorder %s28_s24, %s28_s24 }
  0x1b   :  { %p283_p11 = scmp.ne.s32.totalorder %s28_s24, %s282_s4  ;;  %p288_p13 = scmp.lt.s32.totalorder %s282_s4, %s282_s4 }
  0x1d   :  { %p289_p0 = por %p288_p13, %p287_p12 }
  0x1f   :  { %p290_p1 = pnand %p289_p0, %p283_p11 }
  0x21   :  { %293 = shalt.err (!%p290_p1)
}
  0x22   :  { %33 = dma.hbm_to_vmem [thread:$0]  %s399_s1, 256, %s28_s24, [#allocation7], %s323_s19, %s323_s19, %s324_s20  }
  0x23   :  { %316 = dma.done.wait [#allocation4], 256  }
  0x24   :  { %317 = vsyncadd [#allocation4], 4294967040 }
  0x25   :  { %318 = dma.done.wait [#allocation7], 256  }
  0x26   :  { %319 = vsyncadd [#allocation7], 4294967040  ;;  %vm51_vm0 = vcmask 1043456   ;;  %v118_v0 = vld [vmem:[#allocation3 + $0x8] sm:$0xff]  ;;  %v46_v1 = vld [vmem:[#allocation3] sm:$0xff]  ;;  %vm44_vm1 = vcmask 25600  }
  0x27   :  { %v122_v2 = vcombine.high %v118_v0, %v118_v0  ;;  %v124_v3 = vsel %vm51_vm0, %v118_v0, -inf  ;;  %v49_v4 = vcombine.high %v46_v1, %v46_v1  ;;  %v52_v5 = vsel %vm51_vm0, %v46_v1, -inf  ;;  %s327_s1 = smov [#allocation8]  }
  0x28   :  { %v125_v6 = vrot.slane %v124_v3, 4  ;;  %v53_v7 = vrot.slane %v52_v5, 4  ;;  %vm204_vm2 = vcmask 1040384   ;;  %s220_s6 = sshll.u32 %s327_s1, 4  ;;  %s221_s6 = int_to_ptr.vmem [resolvable:$true] %s220_s6 }
  0x29   :  { %v131_v8 = vsel %vm51_vm0, %v122_v2, -inf  ;;  %v59_v9 = vsel %vm51_vm0, %v49_v4, -inf  ;;  %s294_s7 = scalar_lea.vmem %s221_s6, 32  ;;  %p299_p3 = scmp.lt.s32.totalorder %s221_s6, %s221_s6 }
  0x2a   :  { %v126_v10 = vmax.f32 %v124_v3, %v125_v6  ;;  %v132_v11 = vrot.slane %v131_v8, 4  ;;  %v54_v12 = vmax.f32 %v52_v5, %v53_v7  ;;  %v60_v13 = vrot.slane %v59_v9, 4  ;;  %p295_p2 = scmp.ne.s32.totalorder %s221_s6, %s294_s7  ;;  %p300_p4 = scmp.lt.s32.totalorder %s294_s7, %s294_s7 }
  0x2c   :  { %v127_v14 = vrot.slane %v126_v10, 2  ;;  %v133_v15 = vmax.f32 %v131_v8, %v132_v11  ;;  %v55_v16 = vrot.slane %v54_v12, 2  ;;  %v61_v17 = vmax.f32 %v59_v9, %v60_v13  ;;  %v120_v11 = vld [vmem:[#allocation6 + $0x8] sm:$0xff]  ;;  %p301_p5 = por %p300_p4, %p299_p3 }
  0x2e   :  { %v128_v18 = vmax.f32 %v126_v10, %v127_v14  ;;  %v134_v19 = vrot.slane %v133_v15, 2  ;;  %v56_v20 = vmax.f32 %v54_v12, %v55_v16  ;;  %v62_v21 = vrot.slane %v61_v17, 2  ;;  %v47_v14 = vld [vmem:[#allocation6] sm:$0xff]  ;;  %p302_p6 = pnand %p301_p5, %p295_p2 }
  0x30   :  { %v129_v22 = vrot.slane %v128_v18, 1  ;;  %v135_v23 = vmax.f32 %v133_v15, %v134_v19  ;;  %v57_v24 = vrot.slane %v56_v20, 1  ;;  %v63_v25 = vmax.f32 %v61_v17, %v62_v21 }
  0x32   :  { %v130_v26 = vmax.f32 %v128_v18, %v129_v22  ;;  %v136_v27 = vrot.slane %v135_v23, 1  ;;  %v58_v28 = vmax.f32 %v56_v20, %v57_v24  ;;  %v64_v29 = vrot.slane %v63_v25, 1 }
  0x34   :  { %v137_v30 = vmax.f32 %v135_v23, %v136_v27  ;;  %v65_v31 = vmax.f32 %v63_v25, %v64_v29 }
  0x36   :  { %v140_v32 = vcombine.low %v130_v26, %v137_v30  ;;  %v68_v33 = vcombine.low %v58_v28, %v65_v31 }
  0x38   :  { %v142_v34 = vsub.f32 %v118_v0, %v140_v32  ;;  %v70_v35 = vsub.f32 %v46_v1, %v68_v33 }
  0x3a   :  { %v143_v36 = vmul.f32 1.442695, %v142_v34  ;;  %v71_v37 = vmul.f32 1.442695, %v70_v35 }
  0x3c   :  { %238 = vpow2.f32 %v143_v36  ;;  %v326_v36 = vmov 0.0  }
  0x3d   :  { %240 = vpow2.f32 %v71_v37  ;;  %45 = vst.msk [vmem:[#allocation2] sm:$0x3] %vm44_vm1, %v326_v36  ;;  %v191_v37 = vlaneseq }
  0x46   :  { %v239_v38 = vpop.eup %238 }
  0x47   :  { %v241_v39 = vpop.eup %240  ;;  %v146_v40 = vcombine.high %v239_v38, %v239_v38  ;;  %v148_v41 = vsel %vm51_vm0, %v239_v38, 0.0 }
  0x48   :  { %v149_v42 = vrot.slane %v148_v41, 4  ;;  %v74_v43 = vcombine.high %v241_v39, %v241_v39  ;;  %v76_v44 = vsel %vm51_vm0, %v241_v39, 0.0 }
  0x49   :  { %v155_v45 = vsel %vm51_vm0, %v146_v40, 0.0  ;;  %v77_v46 = vrot.slane %v76_v44, 4  ;;  %v194_v40 = vshrl.u32 %v191_v37, 7 }
  0x4a   :  { %v150_v47 = vadd.f32 %v149_v42, %v148_v41  ;;  %v156_v48 = vrot.slane %v155_v45, 4  ;;  %v83_v49 = vsel %vm51_vm0, %v74_v43, 0.0 }
  0x4b   :  { %v78_v50 = vadd.f32 %v77_v46, %v76_v44  ;;  %v84_v51 = vrot.slane %v83_v49, 4 }
  0x4c   :  { %v151_v52 = vrot.slane %v150_v47, 2  ;;  %v157_v53 = vadd.f32 %v156_v48, %v155_v45 }
  0x4d   :  { %v79_v54 = vrot.slane %v78_v50, 2  ;;  %v85_v55 = vadd.f32 %v84_v51, %v83_v49  ;;  %v189_v49 = vld [vmem:[#allocation2] sm:$0x3] }
  0x4e   :  { %v152_v56 = vadd.f32 %v151_v52, %v150_v47  ;;  %v158_v57 = vrot.slane %v157_v53, 2 }
  0x4f   :  { %v80_v58 = vadd.f32 %v79_v54, %v78_v50  ;;  %v86_v59 = vrot.slane %v85_v55, 2 }
  0x50   :  { %v153_v60 = vrot.slane %v152_v56, 1  ;;  %v159_v61 = vadd.f32 %v158_v57, %v157_v53 }
  0x51   :  { %v81_v62 = vrot.slane %v80_v58, 1  ;;  %v87_v63 = vadd.f32 %v86_v59, %v85_v55 }
  0x52   :  { %v154_v0 = vadd.f32 %v153_v60, %v152_v56  ;;  %v160_v1 = vrot.slane %v159_v61, 1 }
  0x53   :  { %v82_v2 = vadd.f32 %v81_v62, %v80_v58  ;;  %v88_v3 = vrot.slane %v87_v63, 1 }
  0x54   :  { %v161_v4 = vadd.f32 %v160_v1, %v159_v61  ;;  %242 = vrcp.f32 %v154_v0 }
  0x55   :  { %v89_v5 = vadd.f32 %v88_v3, %v87_v63  ;;  %244 = vrcp.f32 %v82_v2 }
  0x56   :  { %246 = vrcp.f32 %v161_v4 }
  0x57   :  { %248 = vrcp.f32 %v89_v5 }
  0x5e   :  { %v243_v6 = vpop.eup %242 }
  0x5f   :  { %v245_v7 = vpop.eup %244 }
  0x60   :  { %v247_v8 = vpop.eup %246 }
  0x61   :  { %v249_v9 = vpop.eup %248  ;;  %v166_v10 = vcombine.low %v243_v6, %v247_v8 }
  0x62   :  { %v94_v12 = vcombine.low %v245_v7, %v249_v9 }
  0x63   :  { %v168_v13 = vmul.f32 %v239_v38, %v166_v10 }
  0x64   :  { %v96_v15 = vmul.f32 %v241_v39, %v94_v12  ;;  %v192_v39 = vand.u32 127, %v191_v37 }
  0x65   :  { %v169_v16 = vmul.f32 %v168_v13, %v120_v11  ;;  %v179_v17 = vadd.f32 %v168_v13, %v120_v11 }
  0x66   :  { %v97_v18 = vmul.f32 %v96_v15, %v47_v14  ;;  %v107_v19 = vadd.f32 %v96_v15, %v47_v14  ;;  %v195_v42 = vsub.s32 %v192_v39, %v194_v40 }
  0x67   :  { %v171_v20 = vcombine.high %v169_v16, %v169_v16  ;;  %v173_v21 = vsel %vm51_vm0, %v169_v16, 0.0  ;;  %v181_v22 = vcombine.high %v179_v17, %v179_v17  ;;  %v183_v27 = vsel %vm51_vm0, %v179_v17, 0.0 }
  0x68   :  { %v99_v23 = vcombine.high %v97_v18, %v97_v18  ;;  %v101_v24 = vsel %vm51_vm0, %v97_v18, 0.0  ;;  %v109_v25 = vcombine.high %v107_v19, %v107_v19  ;;  %v111_v31 = vsel %vm51_vm0, %v107_v19, 0.0 }
  0x69   :  { %v174_v26 = vsel %vm51_vm0, %v171_v20, 0.0  ;;  %v184_v28 = vsel %vm51_vm0, %v181_v22, 0.0 }
  0x6a   :  { %v175_v29 = vadd.f32 %v174_v26, %v173_v21  ;;  %v102_v30 = vsel %vm51_vm0, %v99_v23, 0.0  ;;  %v112_v32 = vsel %vm51_vm0, %v109_v25, 0.0  ;;  %v185_v34 = vadd.f32 %v184_v28, %v183_v27 }
  0x6b   :  { %v103_v33 = vadd.f32 %v102_v30, %v101_v24  ;;  %v113_v35 = vadd.f32 %v112_v32, %v111_v31 }
  0x6c   :  { %176 = vadd.xlane.f32.xlu1 %v175_v29 }
  0x6d   :  { %104 = vadd.xlane.f32.xlu0 %v103_v33 }
  0x70   :  { %186 = vadd.xlane.f32.xlu1 %v185_v34 }
  0x71   :  { %114 = vadd.xlane.f32.xlu0 %v113_v35 }
  0xf9   :  { %v177_v38 = vpop.xlane.xlu1 %176 }
  0xfa   :  { %v105_v41 = vpop.xlane.xlu0 %104 }
  0xfb   :  { %v178_v43 = vadd.f32 %v177_v38, %v105_v41 }
  0xfd   :  { %v187_v44 = vpop.xlane.xlu1 %186  ;;  %v196_v47 = vrot.slane %v178_v43, %v195_v42 }
  0xfe   :  { %v115_v45 = vpop.xlane.xlu0 %114 }
  0xff   :  { %v188_v46 = vadd.f32 %v187_v44, %v115_v45 }
 0x101   :  { %v202_v48 = vrot.slane %v188_v46, %v195_v42 }
 0x103   :  { %v205_v50 = vsel %vm204_vm2, %v196_v47, %v202_v48 }
 0x104   :  { %v206_v51 = vadd.f32 %v205_v50, %v189_v49 }
 0x106   :  { %208 = vst.msk [vmem:[#allocation2] sm:$0x3] %vm44_vm1, %v206_v51 }
 0x10d   :  { %v212_v52 = vld [vmem:[#allocation2] sm:$0x3] }
 0x10e   :  { %213 = vst.msk [vmem:[#allocation8] sm:$0x3] %vm44_vm1, %v212_v52 }
 0x10f   :  { %305 = shalt.err (!%p302_p6)
}
 0x110   :  { %s306_s10 = scalar_lea.hbm %s400_s2, 32 }
 0x111   :  { %p307_p7 = scmp.ne.s32.totalorder %s400_s2, %s306_s10  ;;  %p310_p8 = scmp.lt.u32.totalorder %s306_s10, %s400_s2 }
 0x113   :  { %p312_p9 = pnand %p310_p8, %p307_p7 }
 0x115   :  { %315 = shalt.err (!%p312_p9)
}
 0x116   :  { %223 = dma.vmem_to_hbm [thread:$0]  %s221_s6, 32, %s400_s2, [#allocation5]  }
 0x117   :  { %320 = dma.done.wait [#allocation5], 32  }
 0x118   :  { %321 = vsyncadd [#allocation5], 4294967264 }
 0x119   :  { %227 = vsyncpa [#allocation4], 1 }
 0x11a   :  { %228 = vsyncpa [#allocation7], 1 }
 0x11b   :  { %229 = vsyncpa [#allocation5], 1 }

</bundles_post_ra>
